<compile_context>
chip_gen: v5e
topology: v5e:2x2
jax: 0.10.0
libtpu: 0.0.40
codegen_flags: <defaults>
</compile_context>

<pallas_src>
import functools

import jax
import jax.numpy as jnp
from jax.experimental import pallas as pl
from jax.experimental.pallas import tpu as pltpu


def _round_up(n: int, m: int) -> int:
    return ((n + m - 1) // m) * m


def _mlp_kernel(x_ref, w1_ref, b1_ref, w2_ref, b2_ref, o_ref):
    # hidden = tanh(x @ W1 + b1); f32 accumulation, f32 tanh (EUP slot).
    h = jnp.dot(x_ref[...], w1_ref[...], preferred_element_type=jnp.float32)
    h = jnp.tanh(h + b1_ref[...])             # b1 is (1, H_p), broadcasts over batch
    # Second matmul on the weight dtype (fast MXU path for bf16 weights);
    # accumulation stays f32.
    h = h.astype(w2_ref.dtype)
    out = jnp.dot(h, w2_ref[...], preferred_element_type=jnp.float32)
    o_ref[...] = (out + b2_ref[...]).astype(o_ref.dtype)


@functools.partial(jax.jit, static_argnames=("compute_dtype", "block_batch"))
def neural_network_forward(x, w1, b1, w2, b2, *, compute_dtype=None, block_batch=256):
    """Forward pass of Linear(In->H) -> Tanh -> Linear(H->Out).

    x: (B, In) or (In,); w1: (In, H), b1: (H,), w2: (H, Out), b2: (Out,).
    Returns (B, Out) (or (Out,) for a 1-D input), matching the PyTorch module.
    """
    squeeze = x.ndim == 1
    if squeeze:
        x = x[None, :]

    B, In = x.shape
    H = w1.shape[1]
    Out = w2.shape[1]
    out_dtype = x.dtype
    cdt = jnp.dtype(compute_dtype) if compute_dtype is not None else x.dtype

    # Lane-dense padding: feature dims to multiples of 128 (full vreg lanes,
    # unmasked stores, full MXU columns).
    In_p = _round_up(In, 128)
    H_p = _round_up(H, 128)
    Out_p = _round_up(Out, 128)

    # Batch tiling: sublane multiple of 16 (covers bf16 and f32 min tiles),
    # then pad the batch to a whole number of tiles.
    TB = min(int(block_batch), _round_up(B, 16))
    B_p = _round_up(B, TB)

    x_p = jnp.pad(x, ((0, B_p - B), (0, In_p - In))).astype(cdt)
    w1_p = jnp.pad(w1, ((0, In_p - In), (0, H_p - H))).astype(cdt)
    b1_p = jnp.pad(b1, (0, H_p - H)).reshape(1, H_p).astype(jnp.float32)
    w2_p = jnp.pad(w2, ((0, H_p - H), (0, Out_p - Out))).astype(cdt)
    b2_p = jnp.pad(b2, (0, Out_p - Out)).reshape(1, Out_p).astype(jnp.float32)

    grid = (B_p // TB,)

    out_p = pl.pallas_call(
        _mlp_kernel,
        out_shape=jax.ShapeDtypeStruct((B_p, Out_p), out_dtype),
        grid=grid,
        in_specs=[
            pl.BlockSpec((TB, In_p), lambda i: (i, 0)),       # streamed activations
            pl.BlockSpec((In_p, H_p), lambda i: (0, 0)),      # W1: VMEM-resident
            pl.BlockSpec((1, H_p), lambda i: (0, 0)),         # b1: VMEM-resident
            pl.BlockSpec((H_p, Out_p), lambda i: (0, 0)),     # W2: VMEM-resident
            pl.BlockSpec((1, Out_p), lambda i: (0, 0)),       # b2: VMEM-resident
        ],
        out_specs=pl.BlockSpec((TB, Out_p), lambda i: (i, 0)),
        compiler_params=pltpu.CompilerParams(
            dimension_semantics=("parallel",),                # shard batch across TCs
        ),
    )(x_p, w1_p, b1_p, w2_p, b2_p)

    # TODO(synk): if In/H ever grow so W1/W2 no longer fit VMEM, add a K grid
    # axis with a pl.when-initialized f32 accumulator instead of shrinking TB.
    out = out_p[:B, :Out]
    return out[0] if squeeze else out


def init_params(key, input_size, hidden_size, output_size):
    """Deterministic init mimicking nn.Linear's uniform(-1/sqrt(fan_in), 1/sqrt(fan_in))."""
    k1, k2, k3, k4 = jax.random.split(key, 4)
    bound1 = 1.0 / jnp.sqrt(input_size)
    bound2 = 1.0 / jnp.sqrt(hidden_size)
    w1 = jax.random.uniform(k1, (input_size, hidden_size), jnp.float32, -bound1, bound1)
    b1 = jax.random.uniform(k2, (hidden_size,), jnp.float32, -bound1, bound1)
    w2 = jax.random.uniform(k3, (hidden_size, output_size), jnp.float32, -bound2, bound2)
    b2 = jax.random.uniform(k4, (output_size,), jnp.float32, -bound2, bound2)
    return w1, b1, w2, b2


if __name__ == "__main__":
    input_size, hidden_size, output_size = 16, 32, 8

    key = jax.random.PRNGKey(0)
    kx, kp = jax.random.split(key)
    w1, b1, w2, b2 = init_params(kp, input_size, hidden_size, output_size)

    # --- Toy-size check (matches the original module's usage) ---------------
    batch = 8
    x = jax.random.normal(kx, (batch, input_size), jnp.float32)
    out = neural_network_forward(x, w1, b1, w2, b2)
    out = jax.block_until_ready(out)
    ref = jnp.tanh(x @ w1 + b1) @ w2 + b2
    assert out.shape == (batch, output_size)
    assert jnp.allclose(out, ref, atol=1e-5, rtol=1e-5)

    # --- Larger batch: exercises the batch grid + padding path --------------
    batch2 = 300
    x2 = jax.random.normal(kx, (batch2, input_size), jnp.float32)
    out2 = neural_network_forward(x2, w1, b1, w2, b2)
    out2 = jax.block_until_ready(out2)
    ref2 = jnp.tanh(x2 @ w1 + b1) @ w2 + b2
    assert out2.shape == (batch2, output_size)
    assert jnp.allclose(out2, ref2, atol=1e-5, rtol=1e-5)

    # --- 1-D input path (single observation, as the RL module would use) ----
    x3 = jax.random.normal(kx, (input_size,), jnp.float32)
    out3 = jax.block_until_ready(neural_network_forward(x3, w1, b1, w2, b2))
    ref3 = jnp.tanh(x3 @ w1 + b1) @ w2 + b2
    assert out3.shape == (output_size,)
    assert jnp.allclose(out3, ref3, atol=1e-5, rtol=1e-5)

    print("KERNEL_OK")
</pallas_src>

<mosaic_0001>
module attributes {stable_mosaic.version = 11 : i64} {
  func.func @_mlp_kernel(%arg0: i32, %arg1: memref<16x128xf32, #tpu.memory_space<vmem>>, %arg2: memref<128x128xf32, #tpu.memory_space<vmem>>, %arg3: memref<1x128xf32, #tpu.memory_space<vmem>>, %arg4: memref<128x128xf32, #tpu.memory_space<vmem>>, %arg5: memref<1x128xf32, #tpu.memory_space<vmem>>, %arg6: memref<16x128xf32, #tpu.memory_space<vmem>>) attributes {dimension_semantics = [#tpu.dimension_semantics<parallel>], iteration_bounds = array<i64: 1>, scalar_prefetch = 0 : i64, scratch_operands = 0 : i64, tpu.core_type = #tpu.core_type<tc>, window_params = [{transform_indices = @transform_0, window_bounds = array<i64: 16, 128>}, {pipeline_mode = #tpu.pipeline_mode<synchronous>, transform_indices = @transform_1, window_bounds = array<i64: 128, 128>}, {pipeline_mode = #tpu.pipeline_mode<synchronous>, transform_indices = @transform_2, window_bounds = array<i64: 1, 128>}, {pipeline_mode = #tpu.pipeline_mode<synchronous>, transform_indices = @transform_3, window_bounds = array<i64: 128, 128>}, {pipeline_mode = #tpu.pipeline_mode<synchronous>, transform_indices = @transform_4, window_bounds = array<i64: 1, 128>}, {transform_indices = @transform_5, window_bounds = array<i64: 16, 128>}]} {
    %c0 = arith.constant 0 : index
    %c0_0 = arith.constant 0 : index
    %0 = vector.load %arg1[%c0, %c0_0] : memref<16x128xf32, #tpu.memory_space<vmem>>, vector<16x128xf32>
    %c0_1 = arith.constant 0 : index
    %c0_2 = arith.constant 0 : index
    %1 = vector.load %arg2[%c0_1, %c0_2] : memref<128x128xf32, #tpu.memory_space<vmem>>, vector<128x128xf32>
    %cst = arith.constant dense<0.000000e+00> : vector<16x128xf32>
    %2 = tpu.matmul %0, %1, %cst {dimension_numbers = #tpu.dot_dimension_numbers<[1], [0], [0], [1], [0, 0, 1, 1], [], []>} : vector<16x128xf32>, vector<128x128xf32>, vector<16x128xf32> -> vector<16x128xf32>
    %c0_3 = arith.constant 0 : index
    %c0_4 = arith.constant 0 : index
    %3 = vector.load %arg3[%c0_3, %c0_4] : memref<1x128xf32, #tpu.memory_space<vmem>>, vector<1x128xf32>
    %4 = vector.broadcast %3 : vector<1x128xf32> to vector<16x128xf32>
    %5 = arith.addf %2, %4 : vector<16x128xf32>
    %6 = math.tanh %5 : vector<16x128xf32>
    %c0_5 = arith.constant 0 : index
    %c0_6 = arith.constant 0 : index
    %7 = vector.load %arg4[%c0_5, %c0_6] : memref<128x128xf32, #tpu.memory_space<vmem>>, vector<128x128xf32>
    %cst_7 = arith.constant dense<0.000000e+00> : vector<16x128xf32>
    %8 = tpu.matmul %6, %7, %cst_7 {dimension_numbers = #tpu.dot_dimension_numbers<[1], [0], [0], [1], [0, 0, 1, 1], [], []>} : vector<16x128xf32>, vector<128x128xf32>, vector<16x128xf32> -> vector<16x128xf32>
    %c0_8 = arith.constant 0 : index
    %c0_9 = arith.constant 0 : index
    %9 = vector.load %arg5[%c0_8, %c0_9] : memref<1x128xf32, #tpu.memory_space<vmem>>, vector<1x128xf32>
    %10 = vector.broadcast %9 : vector<1x128xf32> to vector<16x128xf32>
    %11 = arith.addf %8, %10 : vector<16x128xf32>
    %c0_10 = arith.constant 0 : index
    %c0_11 = arith.constant 0 : index
    %12 = vector.load %arg6[%c0_10, %c0_11] : memref<16x128xf32, #tpu.memory_space<vmem>>, vector<16x128xf32>
    tpu.vector_store %arg6[%c0_10, %c0_11], %11 {strides = array<i32>} : memref<16x128xf32, #tpu.memory_space<vmem>>, vector<16x128xf32>,
    return
  }
  func.func @transform_0(%arg0: i32) -> (i32, i32) {
    %c0_i32 = arith.constant 0 : i32
    %c0_i32_0 = arith.constant 0 : i32
    return %arg0, %c0_i32 : i32, i32
  }
  func.func @transform_1(%arg0: i32) -> (i32, i32) {
    %c0_i32 = arith.constant 0 : i32
    %c0_i32_0 = arith.constant 0 : i32
    %c0_i32_1 = arith.constant 0 : i32
    return %c0_i32, %c0_i32_0 : i32, i32
  }
  func.func @transform_2(%arg0: i32) -> (i32, i32) {
    %c0_i32 = arith.constant 0 : i32
    %c0_i32_0 = arith.constant 0 : i32
    %c0_i32_1 = arith.constant 0 : i32
    return %c0_i32, %c0_i32_0 : i32, i32
  }
  func.func @transform_3(%arg0: i32) -> (i32, i32) {
    %c0_i32 = arith.constant 0 : i32
    %c0_i32_0 = arith.constant 0 : i32
    %c0_i32_1 = arith.constant 0 : i32
    return %c0_i32, %c0_i32_0 : i32, i32
  }
  func.func @transform_4(%arg0: i32) -> (i32, i32) {
    %c0_i32 = arith.constant 0 : i32
    %c0_i32_0 = arith.constant 0 : i32
    %c0_i32_1 = arith.constant 0 : i32
    return %c0_i32, %c0_i32_0 : i32, i32
  }
  func.func @transform_5(%arg0: i32) -> (i32, i32) {
    %c0_i32 = arith.constant 0 : i32
    %c0_i32_0 = arith.constant 0 : i32
    return %arg0, %c0_i32 : i32, i32
  }
}

</mosaic_0001>

<bundles_post_ra>
// kernel: neural_network_forward.1
= control target key start
LH: loop header
LB: loop body
LE: loop exit
PB: predicated region body
PF: predicated region fallthrough
CT: control target
= control target key end

     0   :  { %s298_s1 = inlined_call_operand.vmem [shape: f32[128,128], index: 1, kind: input, shape index: {}]   ;;  %s299_s3 = inlined_call_operand.vmem [shape: f32[128,128], index: 3, kind: input, shape index: {}]   ;;  %s300_s2 = inlined_call_operand.vmem [shape: f32[1,128], index: 2, kind: input, shape index: {}]   ;;  %s301_s0 = inlined_call_operand.vmem [shape: f32[16,128], index: 0, kind: input, shape index: {}]   ;;  %s302_s4 = inlined_call_operand.vmem [shape: f32[1,128], index: 4, kind: input, shape index: {}]   ;;  %s303_s5 = inlined_call_operand.vmem [shape: f32[16,128], index: 5, kind: output, shape index: {}]  }
   0x1   :  { %v37_v0 = vld [vmem:[%s298_s1 + $0x78] sm:$0xff]  ;;  %v36_v1 = vld [vmem:[%s298_s1 + $0x70] sm:$0xff]  ;;  %v35_v2 = vld [vmem:[%s298_s1 + $0x68] sm:$0xff] }
   0x2   :  { %116 = vmatpush.msra.mxu2 %v37_v0  ;;  %42 = vmatpush.msra.mxu0 %v37_v0  ;;  %v34_v3 = vld [vmem:[%s298_s1 + $0x60] sm:$0xff]  ;;  %v33_v4 = vld [vmem:[%s298_s1 + $0x58] sm:$0xff]  ;;  %v81_v6 = vld [vmem:[%s299_s3 + $0x70] sm:$0xff] }
   0x3   :  { %v82_v5 = vld [vmem:[%s299_s3 + $0x78] sm:$0xff]  ;;  %v32_v7 = vld [vmem:[%s298_s1 + $0x50] sm:$0xff]  ;;  %v80_v8 = vld [vmem:[%s299_s3 + $0x68] sm:$0xff] }
   0x4   :  { %117 = vmatpush.msra.mxu2 %v36_v1  ;;  %43 = vmatpush.msra.mxu0 %v36_v1  ;;  %v31_v9 = vld [vmem:[%s298_s1 + $0x48] sm:$0xff]  ;;  %v79_v10 = vld [vmem:[%s299_s3 + $0x60] sm:$0xff]  ;;  %v78_v12 = vld [vmem:[%s299_s3 + $0x58] sm:$0xff] }
   0x5   :  { %132 = vmatpush.msra.mxu3 %v82_v5  ;;  %87 = vmatpush.msra.mxu1 %v82_v5  ;;  %v30_v11 = vld [vmem:[%s298_s1 + $0x40] sm:$0xff]  ;;  %v29_v13 = vld [vmem:[%s298_s1 + $0x38] sm:$0xff]  ;;  %v77_v14 = vld [vmem:[%s299_s3 + $0x50] sm:$0xff] }
   0x6   :  { %118 = vmatpush.msra.mxu2 %v35_v2  ;;  %44 = vmatpush.msra.mxu0 %v35_v2  ;;  %v28_v15 = vld [vmem:[%s298_s1 + $0x30] sm:$0xff]  ;;  %v76_v16 = vld [vmem:[%s299_s3 + $0x48] sm:$0xff]  ;;  %v75_v18 = vld [vmem:[%s299_s3 + $0x40] sm:$0xff] }
   0x7   :  { %133 = vmatpush.msra.mxu3 %v81_v6  ;;  %88 = vmatpush.msra.mxu1 %v81_v6  ;;  %v27_v17 = vld [vmem:[%s298_s1 + $0x28] sm:$0xff]  ;;  %v26_v19 = vld [vmem:[%s298_s1 + $0x20] sm:$0xff]  ;;  %v74_v20 = vld [vmem:[%s299_s3 + $0x38] sm:$0xff] }
   0x8   :  { %119 = vmatpush.msra.mxu2 %v34_v3  ;;  %45 = vmatpush.msra.mxu0 %v34_v3  ;;  %v25_v21 = vld [vmem:[%s298_s1 + $0x18] sm:$0xff]  ;;  %v73_v22 = vld [vmem:[%s299_s3 + $0x30] sm:$0xff]  ;;  %v72_v24 = vld [vmem:[%s299_s3 + $0x28] sm:$0xff] }
   0x9   :  { %134 = vmatpush.msra.mxu3 %v80_v8  ;;  %89 = vmatpush.msra.mxu1 %v80_v8  ;;  %v24_v23 = vld [vmem:[%s298_s1 + $0x10] sm:$0xff]  ;;  %v23_v25 = vld [vmem:[%s298_s1 + $0x8] sm:$0xff]  ;;  %v22_v26 = vld [vmem:[%s298_s1] sm:$0xff] }
   0xa   :  { %120 = vmatpush.msra.mxu2 %v33_v4  ;;  %46 = vmatpush.msra.mxu0 %v33_v4  ;;  %v21_v27 = vld [vmem:[%s301_s0 + $0x8] sm:$0xff]  ;;  %v20_v28 = vld [vmem:[%s301_s0] sm:$0xff]  ;;  %v70_v30 = vld [vmem:[%s299_s3 + $0x18] sm:$0xff] }
   0xb   :  { %135 = vmatpush.msra.mxu3 %v79_v10  ;;  %90 = vmatpush.msra.mxu1 %v79_v10  ;;  %v71_v29 = vld [vmem:[%s299_s3 + $0x20] sm:$0xff]  ;;  %v69_v31 = vld [vmem:[%s299_s3 + $0x10] sm:$0xff]  ;;  %v68_v32 = vld [vmem:[%s299_s3 + $0x8] sm:$0xff] }
   0xc   :  { %121 = vmatpush.msra.mxu2 %v32_v7  ;;  %47 = vmatpush.msra.mxu0 %v32_v7  ;;  %v67_v33 = vld [vmem:[%s299_s3] sm:$0xff] }
   0xd   :  { %136 = vmatpush.msra.mxu3 %v78_v12  ;;  %91 = vmatpush.msra.mxu1 %v78_v12  ;;  %v148_v34 = vld [vmem:[%s300_s2] ss:$0 sm:$0xff] }
   0xe   :  { %122 = vmatpush.msra.mxu2 %v31_v9  ;;  %48 = vmatpush.msra.mxu0 %v31_v9  ;;  %v149_v41 = vld [vmem:[%s302_s4] ss:$0 sm:$0xff] }
   0xf   :  { %137 = vmatpush.msra.mxu3 %v77_v14  ;;  %92 = vmatpush.msra.mxu1 %v77_v14 }
  0x10   :  { %123 = vmatpush.msra.mxu2 %v30_v11  ;;  %49 = vmatpush.msra.mxu0 %v30_v11 }
  0x11   :  { %138 = vmatpush.msra.mxu3 %v76_v16  ;;  %93 = vmatpush.msra.mxu1 %v76_v16 }
  0x12   :  { %124 = vmatpush.msra.mxu2 %v29_v13  ;;  %50 = vmatpush.msra.mxu0 %v29_v13 }
  0x13   :  { %139 = vmatpush.msra.mxu3 %v75_v18  ;;  %94 = vmatpush.msra.mxu1 %v75_v18 }
  0x14   :  { %125 = vmatpush.msra.mxu2 %v28_v15  ;;  %51 = vmatpush.msra.mxu0 %v28_v15 }
  0x15   :  { %140 = vmatpush.msra.mxu3 %v74_v20  ;;  %95 = vmatpush.msra.mxu1 %v74_v20 }
  0x16   :  { %126 = vmatpush.msra.mxu2 %v27_v17  ;;  %52 = vmatpush.msra.mxu0 %v27_v17 }
  0x17   :  { %141 = vmatpush.msra.mxu3 %v73_v22  ;;  %96 = vmatpush.msra.mxu1 %v73_v22 }
  0x18   :  { %127 = vmatpush.msra.mxu2 %v26_v19  ;;  %53 = vmatpush.msra.mxu0 %v26_v19 }
  0x19   :  { %142 = vmatpush.msra.mxu3 %v72_v24  ;;  %97 = vmatpush.msra.mxu1 %v72_v24 }
  0x1a   :  { %128 = vmatpush.msra.mxu2 %v25_v21  ;;  %54 = vmatpush.msra.mxu0 %v25_v21 }
  0x1b   :  { %143 = vmatpush.msra.mxu3 %v71_v29  ;;  %98 = vmatpush.msra.mxu1 %v71_v29 }
  0x1c   :  { %129 = vmatpush.msra.mxu2 %v24_v23  ;;  %55 = vmatpush.msra.mxu0 %v24_v23 }
  0x1d   :  { %144 = vmatpush.msra.mxu3 %v70_v30  ;;  %99 = vmatpush.msra.mxu1 %v70_v30 }
  0x1e   :  { %130 = vmatpush.msra.mxu2 %v23_v25  ;;  %56 = vmatpush.msra.mxu0 %v23_v25 }
  0x1f   :  { %145 = vmatpush.msra.mxu3 %v69_v31  ;;  %100 = vmatpush.msra.mxu1 %v69_v31 }
  0x20   :  { %131 = vmatpush.msra.mxu2 %v22_v26  ;;  %57 = vmatpush.msra.mxu0 %v22_v26 }
  0x21   :  { %61 = vmatmul.f32.vlgmr.msra.gmra.mxu2 %v21_v27  ;;  %58 = vmatmul.f32.vlgmr.msra.gmra.mxu0 %v20_v28 }
  0x22   :  { %146 = vmatpush.msra.mxu3 %v68_v32  ;;  %101 = vmatpush.msra.mxu1 %v68_v32 }
  0x24   :  { %147 = vmatpush.msra.mxu3 %v67_v33  ;;  %102 = vmatpush.msra.mxu1 %v67_v33 }
  0x9e   :  { %v59_v35 = vpop.f32.mrf.mxu0 }
  0x9f   :  { %v60_v36 = vadd.f32 %v148_v34, %v59_v35 }
  0xa1   :  { %150 = vtanh.f32 %v60_v36 }
  0xa4   :  { %v62_v37 = vpop.f32.mrf.mxu2 }
  0xa5   :  { %v63_v38 = vadd.f32 %v148_v34, %v62_v37 }
  0xa7   :  { %v151_v39 = vpop.eup %150  ;;  %152 = vtanh.f32 %v63_v38 }
  0xa8   :  { %103 = vmatmul.f32.vlgmr.msra.gmra.mxu1 %v151_v39 }
  0xad   :  { %v153_v40 = vpop.eup %152 }
  0xae   :  { %106 = vmatmul.f32.vlgmr.msra.gmra.mxu3 %v153_v40 }
 0x125   :  { %v104_v42 = vpop.f32.mrf.mxu1 }
 0x126   :  { %v105_v43 = vadd.f32 %v149_v41, %v104_v42 }
 0x128   :  { %110 = vst [vmem:[%s303_s5] sm:$0xff] %v105_v43 }
 0x131   :  { %v107_v44 = vpop.f32.mrf.mxu3 }
 0x132   :  { %v108_v45 = vadd.f32 %v149_v41, %v107_v44 }
 0x134   :  { %111 = vst [vmem:[%s303_s5 + $0x8] sm:$0xff] %v108_v45 }

</bundles_post_ra>
